<compile_context>
chip_gen: v7x
topology: tpu7x:2x2x1
jax: 0.10.0
libtpu: 0.0.40
codegen_flags: <defaults>
</compile_context>

<pallas_src>
import jax
import jax.numpy as jnp
from jax.experimental import pallas as pl
from jax.experimental.pallas import tpu as pltpu


def _round_up(x, m):
    return ((x + m - 1) // m) * m


def _cdiv(a, b):
    return (a + b - 1) // b


# Keep the resident bf16 k-slab (X or XW) at or below this size.  Pallas may
# still double-buffer invariant blocks, so ~2x this counts against VMEM.
_RESIDENT_SLAB_MAX_BYTES = 8 * 1024 * 1024


def _vmem_limit_bytes():
    cap = 64 * 1024 * 1024  # assume v7x per-TensorCore VMEM if query fails
    try:
        cap = pltpu.get_tpu_info().vmem_capacity_bytes
    except Exception:
        pass
    return int(min(0.75 * cap, 100 * 1024 * 1024))


def _make_fused_kernel(tk, resident_slab):
    """Accumulate hatA @ X over k; apply theta + bias in the last-k epilogue."""

    def kernel(hatA_ref, x_ref, theta_ref, bias_ref, out_ref, acc_ref):
        k = pl.program_id(1)

        @pl.when(k == 0)
        def _():
            acc_ref[...] = jnp.zeros_like(acc_ref)

        a = hatA_ref[...].astype(jnp.bfloat16)  # no-op if hatA already bf16
        if resident_slab:
            start = pl.multiple_of(k * tk, tk)
            x = x_ref[pl.ds(start, tk), :]
        else:
            x = x_ref[...]
        acc_ref[...] += jnp.dot(a, x, preferred_element_type=jnp.float32)

        @pl.when(k == pl.num_programs(1) - 1)
        def _():
            o = jnp.dot(acc_ref[...].astype(jnp.bfloat16), theta_ref[...],
                        preferred_element_type=jnp.float32)
            out_ref[...] = (o + bias_ref[...]).astype(out_ref.dtype)

    return kernel


def _make_preproj_kernel(tk, resident_slab):
    """Right operand already projected by theta in the wrapper (D > F case)."""

    def kernel(hatA_ref, xw_ref, bias_ref, out_ref, acc_ref):
        k = pl.program_id(1)

        @pl.when(k == 0)
        def _():
            acc_ref[...] = jnp.zeros_like(acc_ref)

        a = hatA_ref[...].astype(jnp.bfloat16)
        if resident_slab:
            start = pl.multiple_of(k * tk, tk)
            xw = xw_ref[pl.ds(start, tk), :]
        else:
            xw = xw_ref[...]
        acc_ref[...] += jnp.dot(a, xw, preferred_element_type=jnp.float32)

        @pl.when(k == pl.num_programs(1) - 1)
        def _():
            out_ref[...] = (acc_ref[...] + bias_ref[...]).astype(out_ref.dtype)

    return kernel


def gcn_layer(hatA, X, theta, bias=None, *, tm=512, tk=512,
              out_dtype=jnp.float32):
    """GCNLayer forward.  hatA:[N,N], X:[N,D], theta:[D,F], bias:[F] -> [N,F]."""
    N = hatA.shape[0]
    D = X.shape[1]
    F = theta.shape[1]

    if bias is None:
        bias = jnp.zeros((F,), jnp.float32)

    # ---- tile sizing -----------------------------------------------------
    tm = min(tm, _round_up(N, 16))        # 16: native bf16 sublane packing
    tk = min(tk, _round_up(N, 128))
    # Keep >= 2 row tiles so the "parallel" row axis can split across the two
    # v7x TensorCores (harmless extra grid steps on single-TC v5e/v6e).
    if _cdiv(N, tm) < 2 and N >= 32:
        tm = _round_up(_cdiv(N, 2), 16)

    Nr_pad = _round_up(N, tm)     # padded row dim of hatA / output
    Nk_pad = _round_up(N, tk)     # padded contraction dim
    Dp = _round_up(D, 128)
    Fp = _round_up(F, 128)        # lane-dense output features

    # ---- hatA: avoid a wrapper pre-pass over N^2 when possible ------------
    needs_pad = (Nr_pad != N) or (Nk_pad != N)
    if needs_pad:
        # One unavoidable padding pass: fold the bf16 cast into it.
        hatA_in = jnp.zeros((Nr_pad, Nk_pad), jnp.bfloat16).at[:N, :N].set(
            hatA.astype(jnp.bfloat16))
    elif hatA.dtype in (jnp.bfloat16, jnp.float32):
        # Stream as-is; the kernel casts tiles to bf16 on the fly, which is
        # cheaper than an extra HBM read+write pass over the whole matrix.
        hatA_in = hatA
    else:
        hatA_in = hatA.astype(jnp.float32)

    hat_itemsize = jnp.dtype(hatA_in.dtype).itemsize
    out_itemsize = jnp.dtype(out_dtype).itemsize

    bias_p = jnp.zeros((1, Fp), jnp.float32).at[:, :F].set(
        bias.reshape(1, F).astype(jnp.float32))

    grid = (Nr_pad // tm, Nk_pad // tk)
    row_tiles = grid[0]

    cparams = pltpu.CompilerParams(
        dimension_semantics=("parallel", "arbitrary"),
        vmem_limit_bytes=_vmem_limit_bytes(),
    )

    hatA_spec = pl.BlockSpec((tm, tk), lambda i, k: (i, k))
    bias_spec = pl.BlockSpec((1, Fp), lambda i, k: (0, 0))
    out_spec = pl.BlockSpec((tm, Fp), lambda i, k: (i, 0))

    if D <= F:
        # Fused: accumulate hatA @ X over k, apply theta + bias in the epilogue.
        X_slab = jnp.zeros((Nk_pad, Dp), jnp.bfloat16).at[:N, :D].set(
            X.astype(jnp.bfloat16))
        theta_p = jnp.zeros((Dp, Fp), jnp.bfloat16).at[:D, :F].set(
            theta.astype(jnp.bfloat16))

        slab_bytes = Nk_pad * Dp * 2
        resident = slab_bytes <= _RESIDENT_SLAB_MAX_BYTES
        if resident:
            slab_spec = pl.BlockSpec((Nk_pad, Dp), lambda i, k: (0, 0))
            slab_stream_bytes = slab_bytes
        else:
            slab_spec = pl.BlockSpec((tk, Dp), lambda i, k: (k, 0))
            slab_stream_bytes = row_tiles * slab_bytes

        cost = pl.CostEstimate(
            flops=2 * Nr_pad * Nk_pad * Dp + 2 * Nr_pad * Dp * Fp,
            transcendentals=0,
            bytes_accessed=(Nr_pad * Nk_pad * hat_itemsize
                            + slab_stream_bytes
                            + Dp * Fp * 2 + Fp * 4
                            + Nr_pad * Fp * out_itemsize),
        )

        out_p = pl.pallas_call(
            _make_fused_kernel(tk, resident),
            out_shape=jax.ShapeDtypeStruct((Nr_pad, Fp), out_dtype),
            grid_spec=pltpu.PrefetchScalarGridSpec(
                num_scalar_prefetch=0,
                grid=grid,
                in_specs=[
                    hatA_spec,                                       # hatA tile
                    slab_spec,                                       # X slab
                    pl.BlockSpec((Dp, Fp), lambda i, k: (0, 0)),     # theta
                    bias_spec,                                       # bias
                ],
                out_specs=out_spec,
                scratch_shapes=[pltpu.VMEM((tm, Dp), jnp.float32)],
            ),
            compiler_params=cparams,
            cost_estimate=cost,
        )(hatA_in, X_slab, theta_p, bias_p)
    else:
        # D > F: project once in the wrapper (tiny matmul), stream hatA @ XW.
        XW = jnp.dot(X.astype(jnp.float32), theta.astype(jnp.float32))
        XW_slab = jnp.zeros((Nk_pad, Fp), jnp.bfloat16).at[:N, :F].set(
            XW.astype(jnp.bfloat16))

        slab_bytes = Nk_pad * Fp * 2
        resident = slab_bytes <= _RESIDENT_SLAB_MAX_BYTES
        if resident:
            slab_spec = pl.BlockSpec((Nk_pad, Fp), lambda i, k: (0, 0))
            slab_stream_bytes = slab_bytes
        else:
            slab_spec = pl.BlockSpec((tk, Fp), lambda i, k: (k, 0))
            slab_stream_bytes = row_tiles * slab_bytes

        cost = pl.CostEstimate(
            flops=2 * Nr_pad * Nk_pad * Fp,
            transcendentals=0,
            bytes_accessed=(Nr_pad * Nk_pad * hat_itemsize
                            + slab_stream_bytes + Fp * 4
                            + Nr_pad * Fp * out_itemsize),
        )

        out_p = pl.pallas_call(
            _make_preproj_kernel(tk, resident),
            out_shape=jax.ShapeDtypeStruct((Nr_pad, Fp), out_dtype),
            grid_spec=pltpu.PrefetchScalarGridSpec(
                num_scalar_prefetch=0,
                grid=grid,
                in_specs=[hatA_spec, slab_spec, bias_spec],
                out_specs=out_spec,
                scratch_shapes=[pltpu.VMEM((tm, Fp), jnp.float32)],
            ),
            compiler_params=cparams,
            cost_estimate=cost,
        )(hatA_in, XW_slab, bias_p)

    if Nr_pad == N and Fp == F:
        return out_p
    return out_p[:N, :F]


if __name__ == "__main__":
    # Small deterministic problem: N nodes, indim D, outdim F.
    N, D, F = 128, 32, 64
    key = jax.random.PRNGKey(0)
    k_a, k_x, k_t, k_b = jax.random.split(key, 4)

    # Dense "normalized adjacency" stand-in.
    hatA = jax.random.uniform(k_a, (N, N), dtype=jnp.float32)
    X = jax.random.normal(k_x, (N, D), dtype=jnp.float32)

    # Parameter init mirrors the PyTorch module: uniform(-stdv, stdv),
    # stdv = 1/sqrt(outdim).
    stdv = 1.0 / jnp.sqrt(jnp.float32(F))
    theta = jax.random.uniform(k_t, (D, F), minval=-stdv, maxval=stdv,
                               dtype=jnp.float32)
    bias = jax.random.uniform(k_b, (F,), minval=-stdv, maxval=stdv,
                              dtype=jnp.float32)

    out = gcn_layer(hatA, X, theta, bias)
    out = jax.block_until_ready(out)

    # Cross-check against plain JAX reference (bf16 operands on the MXU with
    # f32 accumulation -> relaxed tolerance vs. the pure-f32 reference).
    ref = hatA @ X @ theta + bias
    assert out.shape == (N, F)
    assert jnp.allclose(out, ref, atol=5e-2, rtol=2e-2), float(
        jnp.max(jnp.abs(out - ref)))

    print("KERNEL_OK")
</pallas_src>

<mosaic_0001>
module attributes {stable_mosaic.version = 11 : i64} {
  func.func @kernel(%arg0: i32, %arg1: i32, %arg2: memref<64x128xf32, #tpu.memory_space<vmem>>, %arg3: memref<128x128xbf16, #tpu.memory_space<vmem>>, %arg4: memref<128x128xbf16, #tpu.memory_space<vmem>>, %arg5: memref<1x128xf32, #tpu.memory_space<vmem>>, %arg6: memref<64x128xf32, #tpu.memory_space<vmem>>, %arg7: memref<64x128xf32, #tpu.memory_space<vmem>>) attributes {dimension_semantics = [#tpu.dimension_semantics<parallel>, #tpu.dimension_semantics<arbitrary>], iteration_bounds = array<i64: 2, 1>, scalar_prefetch = 0 : i64, scratch_operands = 1 : i64, tpu.core_type = #tpu.core_type<tc>, window_params = [{transform_indices = @transform_0, window_bounds = array<i64: 64, 128>}, {pipeline_mode = #tpu.pipeline_mode<synchronous>, transform_indices = @transform_1, window_bounds = array<i64: 128, 128>}, {pipeline_mode = #tpu.pipeline_mode<synchronous>, transform_indices = @transform_2, window_bounds = array<i64: 128, 128>}, {pipeline_mode = #tpu.pipeline_mode<synchronous>, transform_indices = @transform_3, window_bounds = array<i64: 1, 128>}, {transform_indices = @transform_4, window_bounds = array<i64: 64, 128>}]} {
    %c0_i32 = arith.constant 0 : i32
    %0 = arith.cmpi eq, %arg1, %c0_i32 : i32
    %1 = arith.extui %0 : i1 to i32
    %c0_i32_0 = arith.constant 0 : i32
    %2 = arith.cmpi ne, %1, %c0_i32_0 : i32
    scf.if %2 {
      %cst_9 = arith.constant 0.000000e+00 : f32
      %16 = vector.broadcast %cst_9 : f32 to vector<64x128xf32>
      %c0_10 = arith.constant 0 : index
      %c0_11 = arith.constant 0 : index
      %17 = vector.load %arg7[%c0_10, %c0_11] : memref<64x128xf32, #tpu.memory_space<vmem>>, vector<64x128xf32>
      tpu.vector_store %arg7[%c0_10, %c0_11], %16 {strides = array<i32>} : memref<64x128xf32, #tpu.memory_space<vmem>>, vector<64x128xf32>,
    } else {
    }
    %c0 = arith.constant 0 : index
    %c0_1 = arith.constant 0 : index
    %3 = vector.load %arg2[%c0, %c0_1] : memref<64x128xf32, #tpu.memory_space<vmem>>, vector<64x128xf32>
    %4 = arith.truncf %3 : vector<64x128xf32> to vector<64x128xbf16>
    %c128_i32 = arith.constant 128 : i32
    %5 = arith.muli %arg1, %c128_i32 : i32
    %6 = tpu.assume_multiple %5, 128 : i32
    %7 = arith.index_cast %6 : i32 to index
    %c0_2 = arith.constant 0 : index
    %8 = vector.load %arg3[%7, %c0_2] : memref<128x128xbf16, #tpu.memory_space<vmem>>, vector<128x128xbf16>
    %c0_3 = arith.constant 0 : index
    %c0_4 = arith.constant 0 : index
    %9 = vector.load %arg7[%c0_3, %c0_4] : memref<64x128xf32, #tpu.memory_space<vmem>>, vector<64x128xf32>
    %cst = arith.constant dense<0.000000e+00> : vector<64x128xf32>
    %10 = tpu.matmul %4, %8, %cst {dimension_numbers = #tpu.dot_dimension_numbers<[1], [0], [0], [1], [0, 0, 1, 1], [], []>} : vector<64x128xbf16>, vector<128x128xbf16>, vector<64x128xf32> -> vector<64x128xf32>
    %11 = arith.addf %9, %10 : vector<64x128xf32>
    %c0_5 = arith.constant 0 : index
    %c0_6 = arith.constant 0 : index
    %12 = vector.load %arg7[%c0_5, %c0_6] : memref<64x128xf32, #tpu.memory_space<vmem>>, vector<64x128xf32>
    tpu.vector_store %arg7[%c0_5, %c0_6], %11 {strides = array<i32>} : memref<64x128xf32, #tpu.memory_space<vmem>>, vector<64x128xf32>,
    %c0_i32_7 = arith.constant 0 : i32
    %13 = arith.cmpi eq, %arg1, %c0_i32_7 : i32
    %14 = arith.extui %13 : i1 to i32
    %c0_i32_8 = arith.constant 0 : i32
    %15 = arith.cmpi ne, %14, %c0_i32_8 : i32
    scf.if %15 {
      %c0_9 = arith.constant 0 : index
      %c0_10 = arith.constant 0 : index
      %16 = vector.load %arg7[%c0_9, %c0_10] : memref<64x128xf32, #tpu.memory_space<vmem>>, vector<64x128xf32>
      %17 = arith.truncf %16 : vector<64x128xf32> to vector<64x128xbf16>
      %c0_11 = arith.constant 0 : index
      %c0_12 = arith.constant 0 : index
      %18 = vector.load %arg4[%c0_11, %c0_12] : memref<128x128xbf16, #tpu.memory_space<vmem>>, vector<128x128xbf16>
      %cst_13 = arith.constant dense<0.000000e+00> : vector<64x128xf32>
      %19 = tpu.matmul %17, %18, %cst_13 {dimension_numbers = #tpu.dot_dimension_numbers<[1], [0], [0], [1], [0, 0, 1, 1], [], []>} : vector<64x128xbf16>, vector<128x128xbf16>, vector<64x128xf32> -> vector<64x128xf32>
      %c0_14 = arith.constant 0 : index
      %c0_15 = arith.constant 0 : index
      %20 = vector.load %arg5[%c0_14, %c0_15] : memref<1x128xf32, #tpu.memory_space<vmem>>, vector<1x128xf32>
      %21 = vector.broadcast %20 : vector<1x128xf32> to vector<64x128xf32>
      %22 = arith.addf %19, %21 : vector<64x128xf32>
      %c0_16 = arith.constant 0 : index
      %c0_17 = arith.constant 0 : index
      %23 = vector.load %arg6[%c0_16, %c0_17] : memref<64x128xf32, #tpu.memory_space<vmem>>, vector<64x128xf32>
      tpu.vector_store %arg6[%c0_16, %c0_17], %22 {strides = array<i32>} : memref<64x128xf32, #tpu.memory_space<vmem>>, vector<64x128xf32>,
    } else {
    }
    return
  }
  func.func @transform_0(%arg0: i32, %arg1: i32) -> (i32, i32) {
    %c0_i32 = arith.constant 0 : i32
    return %arg0, %arg1 : i32, i32
  }
  func.func @transform_1(%arg0: i32, %arg1: i32) -> (i32, i32) {
    %c0_i32 = arith.constant 0 : i32
    %c0_i32_0 = arith.constant 0 : i32
    %c0_i32_1 = arith.constant 0 : i32
    return %c0_i32, %c0_i32_0 : i32, i32
  }
  func.func @transform_2(%arg0: i32, %arg1: i32) -> (i32, i32) {
    %c0_i32 = arith.constant 0 : i32
    %c0_i32_0 = arith.constant 0 : i32
    %c0_i32_1 = arith.constant 0 : i32
    return %c0_i32, %c0_i32_0 : i32, i32
  }
  func.func @transform_3(%arg0: i32, %arg1: i32) -> (i32, i32) {
    %c0_i32 = arith.constant 0 : i32
    %c0_i32_0 = arith.constant 0 : i32
    %c0_i32_1 = arith.constant 0 : i32
    return %c0_i32, %c0_i32_0 : i32, i32
  }
  func.func @transform_4(%arg0: i32, %arg1: i32) -> (i32, i32) {
    %c0_i32 = arith.constant 0 : i32
    %c0_i32_0 = arith.constant 0 : i32
    return %arg0, %c0_i32 : i32, i32
  }
}

</mosaic_0001>

<bundles_post_ra>
// kernel: tpu_custom_call.1
= control target key start
LH: loop header
LB: loop body
LE: loop exit
PB: predicated region body
PF: predicated region fallthrough
CT: control target
= control target key end

     0   :  { %9 = vsyncpa [#allocation4], 0  ;;  %s1418_s0 = inlined_call_operand.hbm [shape: f32[128,128], index: 0, kind: input, shape index: {}]   ;;  %s1419_s1 = inlined_call_operand.hbm [shape: bf16[128,128], index: 1, kind: input, shape index: {}]   ;;  %s1420_s2 = inlined_call_operand.hbm [shape: bf16[128,128], index: 2, kind: input, shape index: {}]   ;;  %s1421_s3 = inlined_call_operand.vmem [shape: f32[1,128], index: 3, kind: input, shape index: {}]   ;;  %s1422_s4 = inlined_call_operand.hbm [shape: f32[128,128], index: 4, kind: output, shape index: {}]  }
   0x1   :  { %11 = vsyncpa [#allocation4 + $0x1], 0 }
   0x2   :  { %12 = vsyncpa [#allocation7], 0 }
   0x3   :  { %13 = vsyncpa [#allocation5], 0 }
   0x4   :  { %15 = vsyncpa [#allocation5 + $0x1], 0  ;;  %s1146_s15 = smov 0   ;;  %s1148_s16 = smov 0  }
   0x5   :  { %s1150_s17 = smov 0   ;;  %s1152_s18 = smov 0  }
   0x6   :  { %s1154_s19 = smov 0   ;;  %s1156_s20 = smov 0  }
   0x7 LB: > { %s722_s21 = sadd.s32 4294967295, %s1109_s20   ;;  %s723_s22 = sadd.s32 4294967294, %s1109_s20   ;;  %s1109_s20 = sphi %s1156_s20, %s21_s20   ;;  %s1105_s19 = sphi %s1154_s19, %s1444_s19   ;;  %s1101_s18 = sphi %s1152_s18, %s1443_s18   ;;  %s1097_s17 = sphi %s1150_s17, %s1442_s17   ;;  %s1093_s16 = sphi %s1148_s16, %s1441_s16   ;;  %s1089_s15 = sphi %s1146_s15, %s1440_s15  }
   0x8   : > { %p55_p0 = scmp.ne.s32.totalorder %s1093_s16, %s1089_s15  ;;  %p1180_p1 = scmp.eq.s32.totalorder %s722_s21, 0 }
   0x9   : > { %p1184_p2 = scmp.eq.s32.totalorder %s722_s21, 1  ;;  %p148_p3 = scmp.eq.s32.totalorder %s723_s22, 1 }
   0xa   : > { %s1427_s23 = scalar_select %p1180_p1, 1, 0 }
   0xb   : > { %p1190_p4 = por %p1180_p1, %p55_p0  ;;  %p724_p5 = scmp.ge.s32.totalorder %s1109_s20, 1 }
   0xc   : > { %p1195_p6 = por %p148_p3, %p55_p0  ;;  %p155_p7 = scmp.lt.s32.totalorder %s1109_s20, 3 }
   0xd   : > { %s1429_s25 = scalar_select %p1190_p4, 1, 0 }
   0xe   : > { %s1430_s26 = scalar_select %p1195_p6, 1, 0 }
   0xf   : > { %p1200_p8 = pnand %p724_p5, %p155_p7  ;;  %s1111_s28 = smov [#allocation6]  }
  0x10   : > { %s167_s29 = sshll.u32 %s1111_s28, 4  ;;  %s1112_s5 = smov [#allocation8]   ;;  %s1204_s29 = int_to_ptr.vmem [resolvable:$true] %s167_s29 }
  0x11   : > { %p844_p9 = pneg %p1200_p8  ;;  %s180_s6 = sshll.u32 %s1112_s5, 4  ;;  %s1215_s6 = int_to_ptr.vmem [resolvable:$true] %s180_s6 }
  0x12   : > { %s937_s9 = scalar_lea.hbm %s1419_s1, 1024 }
  0x13   : > { %p1211_p11 = pnand %p844_p9, %p1180_p1  ;;  %p938_p12 = scmp.ne.s32.totalorder %s1419_s1, %s937_s9 }
  0x14   : > { %p944_p5 = scmp.lt.u32.totalorder %s937_s9, %s1419_s1 }
  0x15   : > { %p939_p13 = pneg %p1211_p11 }
  0x17   : > { %p940_p0 = pnand %p939_p13, %p938_p12 }
  0x19   : > { %p941_p3 = pneg %p940_p0 }
  0x1b   : > { %p946_p7 = pnand %p944_p5, %p941_p3 }
  0x1d   : > { %949 = shalt.err (!%p946_p7)
}
  0x1e   : > { %s950_s14 = scalar_lea.vmem %s1204_s29, 1024  ;;  %p958_p1 = scmp.lt.s32.totalorder %s1204_s29, %s1204_s29 }
  0x1f   : > { %p951_p9 = scmp.ne.s32.totalorder %s1204_s29, %s950_s14  ;;  %p959_p12 = scmp.lt.s32.totalorder %s950_s14, %s950_s14 }
  0x21   : > { %p953_p10 = pnand %p951_p9, %p939_p13  ;;  %p960_p0 = por %p959_p12, %p958_p1 }
  0x23   : > { %p954_p6 = pneg %p953_p10 }
  0x25   : > { %p961_p4 = pnand %p960_p0, %p954_p6 }
  0x27   : > { %964 = shalt.err (!%p961_p4)
}
  0x28   : > { %s1113_s21 = smov 64   ;;  %s1114_s22 = smov 4  }
  0x29   : > { %847 = dma.hbm_to_vmem [thread:$0]  (!%p1211_p11), %s1419_s1, 1024, %s1204_s29, [#allocation7], %s1113_s21, %s1113_s21, %s1114_s22  }
  0x2a   : > { %s965_s9 = scalar_lea.hbm %s1420_s2, 1024 }
  0x2b   : > { %p966_p1 = scmp.ne.s32.totalorder %s1420_s2, %s965_s9  ;;  %p972_p10 = scmp.lt.u32.totalorder %s965_s9, %s1420_s2 }
  0x2d   : > { %p968_p4 = pnand %p966_p1, %p939_p13 }
  0x2f   : > { %p969_p6 = pneg %p968_p4 }
  0x31   : > { %p974_p3 = pnand %p972_p10, %p969_p6 }
  0x33   : > { %977 = shalt.err (!%p974_p3)
}
  0x34   : > { %s978_s29 = scalar_lea.vmem %s1215_s6, 1024  ;;  %p986_p12 = scmp.lt.s32.totalorder %s1215_s6, %s1215_s6 }
  0x35   : > { %p979_p5 = scmp.ne.s32.totalorder %s1215_s6, %s978_s29  ;;  %p987_p0 = scmp.lt.s32.totalorder %s978_s29, %s978_s29 }
  0x37   : > { %p981_p7 = pnand %p979_p5, %p939_p13  ;;  %p988_p1 = por %p987_p0, %p986_p12 }
  0x39   : > { %p982_p9 = pneg %p981_p7 }
  0x3b   : > { %p989_p4 = pnand %p988_p1, %p982_p9 }
  0x3d   : > { %992 = shalt.err (!%p989_p4)
}
  0x3e   : > { %850 = dma.hbm_to_vmem [thread:$0]  (!%p1211_p11), %s1420_s2, 1024, %s1215_s6, [#allocation7], %s1113_s21, %s1113_s21, %s1114_s22  }
  0x3f   : > { %s33_s5 = sadd.s32 1, %s1105_s19  ;;  %s42_s7 = sadd.s32 1, %s1097_s17 }
  0x40   : > { %p35_p13 = scmp.ge.s32.totalorder %s33_s5, 2  ;;  %p49_p6 = scmp.ne.s32.totalorder %s1097_s17, %s1093_s16 }
  0x41   : > { %p50_p10 = scmp.eq.s32.totalorder %s1109_s20, 0  ;;  %p861_p3 = scmp.lt.s32.totalorder %s1109_s20, 2 }
  0x42   : > { %s1446_s5 = smov (%p35_p13, %s33_s5), 0  ;;  %p1279_p7 = por %p1184_p2, %p49_p6 }
  0x43   : > { %p51_p5 = por %p50_p10, %p49_p6  ;;  %s37_s8 = ssub.s32 %s1105_s19, %s1446_s5 }
  0x44   : > { %s1433_s30 = scalar_select %p1279_p7, 1, 0 }
  0x45   : > { %s197_s9 = sand.u32 1, %s1097_s17   ;;  %p40_p9 = scmp.eq.s32.totalorder %s37_s8, 0 }
  0x46   : > { %s728_s6 = sshll.u32 %s197_s9, 6  ;;  %s758_s21 = sshll.u32 %s1105_s19, 10 }
  0x47   : > { %s1288_s22 = scalar_select %p40_p9, %s1097_s17, %s42_s7  }
  0x48   : > { %s1293_s12 = scalar_lea.hbm %s1418_s0, %s758_s21  ;;  %s201_s24 = scalar_lea.vmem [#allocation3], %s728_s6 }
  0x49   : > { %s209_s13 = sshll.u32 %s201_s24, 4  ;;  %p1297_p2 = pnand %p861_p3, %p51_p5  ;;  %s1301_s13 = int_to_ptr.vmem [resolvable:$true] %s209_s13 }
  0x4a   : > { %s1303_s14 = scalar_lea.sflag [#allocation4], %s197_s9  ;;  %s993_s28 = scalar_lea.hbm %s1293_s12, 1024 }
  0x4b   : > { %p994_p11 = scmp.ne.s32.totalorder %s1293_s12, %s993_s28  ;;  %p995_p12 = pneg %p1297_p2 }
  0x4c   : > { %s998_s6 = scalar_lea.hbm %s1418_s0, 2048  ;;  %p999_p4 = scmp.lt.u32.totalorder %s1293_s12, %s1418_s0 }
  0x4d   : > { %p996_p0 = pnand %p995_p12, %p994_p11  ;;  %p1000_p13 = scmp.lt.u32.totalorder %s998_s6, %s993_s28 }
  0x4e   : > { %p1002_p10 = scmp.lt.u32.totalorder %s993_s28, %s1293_s12 }
  0x4f   : > { %p997_p1 = pneg %p996_p0  ;;  %p1001_p6 = por %p1000_p13, %p999_p4 }
  0x51   : > { %p1003_p3 = por %p1002_p10, %p1001_p6 }
  0x53   : > { %p1004_p5 = pnand %p1003_p3, %p997_p1 }
  0x55   : > { %1007 = shalt.err (!%p1004_p5)
}
  0x56   : > { %s1008_s9 = scalar_lea.vmem %s1301_s13, 1024  ;;  %s1115_s11 = smov [#allocation3]  }
  0x57   : > { %p1009_p9 = scmp.ne.s32.totalorder %s1301_s13, %s1008_s9  ;;  %s1013_s24 = sshll.u32 %s1115_s11, 4  ;;  %s1014_s24 = int_to_ptr.vmem [resolvable:$false] %s1013_s24 }
  0x58   : > { %s1015_s7 = scalar_lea.vmem %s1014_s24, 2048  ;;  %p1016_p7 = scmp.lt.s32.totalorder %s1301_s13, %s1014_s24 }
  0x59   : > { %p1011_p11 = pnand %p1009_p9, %p995_p12  ;;  %p1017_p4 = scmp.lt.s32.totalorder %s1015_s7, %s1008_s9 }
  0x5b   : > { %p1012_p0 = pneg %p1011_p11  ;;  %p1018_p13 = por %p1017_p4, %p1016_p7 }
  0x5d   : > { %p1019_p6 = pnand %p1018_p13, %p1012_p0 }
  0x5f   : > { %1022 = shalt.err (!%p1019_p6)
}
  0x60   : > { %s1116_s28 = smov 128   ;;  %s1117_s8 = smov 8  }
  0x61   : > { %854 = dma.hbm_to_vmem [thread:$0]  (!%p1297_p2), %s1293_s12, 1024, %s1301_s13, %s1303_s14, %s1116_s28, %s1116_s28, %s1117_s8  }
  0x62   : > { %221 = sbr.rel (%p1200_p8) target bundleno = 600 (0x258), region = 36  ;;  %s1334_s6 = sand.u32 (!%p1200_p8), 1, %s1093_s16  }
  0x63   : > { %s732_s21 = sshll.u32 (!%p1200_p8), %s1334_s6, 6  ;;  %s224_s10 = scalar_lea.sflag (!%p1200_p8), [#allocation4], %s1334_s6 }
  0x64   : > { %s1340_s9 = scalar_lea.vmem (!%p1200_p8), [#allocation3], %s732_s21  ;;  %p1435_p7 = scmp.ne.s32.totalorder (!%p1200_p8), %s1429_s25, 0 }
  0x69   : > { %1076 = dma.done.wait (%p1435_p7), %s224_s10, 1024  }
  0x6a   : > { %1078 = vsyncadd (%p1435_p7), %s224_s10, 4294966272  ;;  %p1436_p2 = scmp.ne.s32.totalorder %s1427_s23, 0 }
  0x6c   : > { %1080 = dma.done.wait (%p1436_p2), [#allocation7], 2048  }
  0x6d   : > { %1082 = vsyncadd (%p1436_p2), [#allocation7], 4294965248  ;;  %v921_v0 = vld [vmem:[#allocation6] sm:$0xff]   ;;  %v922_v1 = vld [vmem:[#allocation6 + $0x8] sm:$0xff]   ;;  %s259_s27 = scalar_lea.vmem [#allocation9], %s732_s21  ;;  %s759_s13 = sshll.u32 %s1101_s18, 10 }
  0x6e   : > { %784 = vmatprep.subr.bf16.mxu0 %v921_v0  ;;  %v923_v2 = vld [vmem:[#allocation6 + $0x10] sm:$0xff]   ;;  %v924_v3 = vld [vmem:[#allocation6 + $0x18] sm:$0xff]   ;;  %v275_v4 = vld [vmem:[%s1340_s9] sm:$0xff]  ;;  %s618_s12 = sshll.u32 %s259_s27, 4  ;;  %s1369_s11 = scalar_lea.hbm %s1422_s4, %s759_s13  ;;  %s1364_s12 = int_to_ptr.vmem [resolvable:$true] %s618_s12 }
  0x6f   : > { %785 = vmatpush3.bf16.msra.mxu0 %v921_v0  ;;  %v276_v5 = vld [vmem:[%s1340_s9 + $0x8] sm:$0xff]  ;;  %v925_v7 = vld [vmem:[#allocation6 + $0x20] sm:$0xff]   ;;  %v931_v10 = vld [vmem:[#allocation8 + $0x10] sm:$0xff]   ;;  %s605_s18 = scalar_lea.sflag [#allocation5], %s1334_s6  ;;  %s1023_s24 = scalar_lea.vmem %s1364_s12, 1024 }
  0x70   : > { %786 = vmatprep.subr.bf16.mxu0 %v922_v1  ;;  %v283_v6 = vpack.c.bf16 %v276_v5, %v275_v4  ;;  %v929_v8 = vld [vmem:[#allocation8] sm:$0xff]   ;;  %v930_v9 = vld [vmem:[#allocation8 + $0x8] sm:$0xff]   ;;  %v932_v12 = vld [vmem:[#allocation8 + $0x18] sm:$0xff]   ;;  %p1024_p8 = scmp.ne.s32.totalorder %s1364_s12, %s1023_s24  ;;  %p1437_p12 = scmp.ne.s32.totalorder %s1433_s30, 0 }
  0x71   : > { %808 = vmatprep.subr.bf16.mxu1 %v929_v8  ;;  %v926_v11 = vld [vmem:[#allocation6 + $0x28] sm:$0xff]   ;;  %v927_v13 = vld [vmem:[#allocation6 + $0x30] sm:$0xff]   ;;  %v933_v14 = vld [vmem:[#allocation8 + $0x20] sm:$0xff]   ;;  %s1118_s7 = smov [#allocation9]  }
  0x72   : > { %800 = vmatprep.mubr.bf16.mxu0 %v283_v6  ;;  %809 = vmatpush3.bf16.msra.mxu1 %v929_v8  ;;  %v928_v15 = vld [vmem:[#allocation6 + $0x38] sm:$0xff]   ;;  %v277_v16 = vld [vmem:[%s1340_s9 + $0x10] sm:$0xff]  ;;  %v934_v18 = vld [vmem:[#allocation8 + $0x28] sm:$0xff]   ;;  %p1025_p1 = pnand %p1024_p8, %p1437_p12  ;;  %s1027_s28 = sshll.u32 %s1118_s7, 4  ;;  %s1028_s28 = int_to_ptr.vmem [resolvable:$false] %s1027_s28 }
  0x73   : > { %787 = vmatpush3.bf16.msra.mxu0 %v922_v1  ;;  %810 = vmatprep.subr.bf16.mxu1 %v930_v9  ;;  %v278_v17 = vld [vmem:[%s1340_s9 + $0x18] sm:$0xff]  ;;  %v279_v19 = vld [vmem:[%s1340_s9 + $0x20] sm:$0xff]  ;;  %v280_v20 = vld [vmem:[%s1340_s9 + $0x28] sm:$0xff]  ;;  %s1029_s8 = scalar_lea.vmem %s1028_s28, 2048  ;;  %p1030_p3 = scmp.lt.s32.totalorder %s1364_s12, %s1028_s28 }
  0x74   : > { %788 = vmatprep.subr.bf16.mxu0 %v923_v2  ;;  %v284_v21 = vpack.c.bf16 %v278_v17, %v277_v16  ;;  %v285_v22 = vpack.c.bf16 %v280_v20, %v279_v19  ;;  %v935_v23 = vld [vmem:[#allocation8 + $0x30] sm:$0xff]   ;;  %v282_v25 = vld [vmem:[%s1340_s9 + $0x38] sm:$0xff]  ;;  %v744_v40 = vld [vmem:[%s1421_s3] ss:$0 sm:$0xff]  ;;  %p1026_p10 = pneg %p1025_p1  ;;  %p1031_p5 = scmp.lt.s32.totalorder %s1029_s8, %s1023_s24 }
  0x75   : > { %v281_v24 = vld [vmem:[%s1340_s9 + $0x30] sm:$0xff]  ;;  %v936_v27 = vld [vmem:[#allocation8 + $0x38] sm:$0xff]  }
  0x76   : > { %811 = vmatpush3.bf16.msra.mxu1 %v930_v9  ;;  %v286_v26 = vpack.c.bf16 %v282_v25, %v281_v24  ;;  %p1032_p9 = por %p1031_p5, %p1030_p3 }
  0x77   : > { %789 = vmatpush3.bf16.msra.mxu0 %v923_v2  ;;  %812 = vmatprep.subr.bf16.mxu1 %v931_v10 }
  0x78   : > { %790 = vmatprep.subr.bf16.mxu0 %v924_v3  ;;  %p1033_p11 = pnand %p1032_p9, %p1026_p10 }
  0x7a   : > { %813 = vmatpush3.bf16.msra.mxu1 %v931_v10 }
  0x7b   : > { %791 = vmatpush3.bf16.msra.mxu0 %v924_v3  ;;  %814 = vmatprep.subr.bf16.mxu1 %v932_v12 }
  0x7c   : > { %792 = vmatprep.subr.bf16.mxu0 %v925_v7 }
  0x7e   : > { %815 = vmatpush3.bf16.msra.mxu1 %v932_v12 }
  0x7f   : > { %793 = vmatpush3.bf16.msra.mxu0 %v925_v7  ;;  %816 = vmatprep.subr.bf16.mxu1 %v933_v14 }
  0x80   : > { %794 = vmatprep.subr.bf16.mxu0 %v926_v11 }
  0x82   : > { %817 = vmatpush3.bf16.msra.mxu1 %v933_v14 }
  0x83   : > { %795 = vmatpush3.bf16.msra.mxu0 %v926_v11  ;;  %818 = vmatprep.subr.bf16.mxu1 %v934_v18 }
  0x84   : > { %796 = vmatprep.subr.bf16.mxu0 %v927_v13 }
  0x86   : > { %819 = vmatpush3.bf16.msra.mxu1 %v934_v18 }
  0x87   : > { %797 = vmatpush3.bf16.msra.mxu0 %v927_v13  ;;  %820 = vmatprep.subr.bf16.mxu1 %v935_v23 }
  0x88   : > { %798 = vmatprep.subr.bf16.mxu0 %v928_v15 }
  0x8a   : > { %821 = vmatpush3.bf16.msra.mxu1 %v935_v23 }
  0x8b   : > { %799 = vmatpush3.bf16.msra.mxu0 %v928_v15  ;;  %822 = vmatprep.subr.bf16.mxu1 %v936_v27 }
  0x8e   : > { %801 = vmatmul.mubr.bf16.vlgmr.msra.gmra.mrb[0].mxu0 %v284_v21  ;;  %823 = vmatpush3.bf16.msra.mxu1 %v936_v27 }
  0x8f   : > { %804 = vmatprep.mubr.bf16.mxu0 %v285_v22 }
  0x96   : > { %805 = vmatmul.mubr.bf16.gmra.mrb[4].mxu0 %v286_v26 }
 0x161   : > { %v802_v28 = vpop.f32.mrb[0].mxu0 }
 0x162   : > { %v398_v29 = vpop.f32.mrb[1].mxu0 }
 0x163   : > { %v803_v30 = vpop.f32.mrb[2].mxu0 }
 0x164   : > { %v457_v31 = vpack.c.bf16 %v803_v30, %v802_v28  ;;  %v401_v32 = vpop.f32.mrb[3].mxu0 }
 0x165   : > { %v456_v33 = vpack.c.bf16 %v401_v32, %v398_v29 }
 0x167   : > { %824 = vmatprep.mubr.bf16.mxu1 %v456_v33 }
 0x168   : > { %825 = vmatmul.mubr.bf16.vlgmr.msra.gmra.mrb[0].mxu1 %v457_v31 }
 0x169   : > { %v806_v34 = vpop.f32.mrb[4].mxu0 }
 0x16a   : > { %v414_v35 = vpop.f32.mrb[5].mxu0 }
 0x16b   : > { %v807_v36 = vpop.f32.mrb[6].mxu0 }
 0x16c   : > { %v459_v37 = vpack.c.bf16 %v807_v36, %v806_v34  ;;  %v417_v38 = vpop.f32.mrb[7].mxu0 }
 0x16d   : > { %v458_v39 = vpack.c.bf16 %v417_v38, %v414_v35 }
 0x16f   : > { %828 = vmatprep.mubr.bf16.mxu1 %v458_v39 }
 0x170   : > { %829 = vmatmul.mubr.bf16.gmra.mrb[4].mxu1 %v459_v37 }
 0x23b   : > { %v826_v41 = vpop.f32.mrb[0].mxu1 }
 0x23c   : > { %v574_v42 = vadd.f32 %v826_v41, %v744_v40  ;;  %v565_v43 = vpop.f32.mrb[1].mxu1 }
 0x23d   : > { %v566_v44 = vadd.f32 %v744_v40, %v565_v43  ;;  %v827_v45 = vpop.f32.mrb[2].mxu1 }
 0x23e   : > { %598 = vst [vmem:[%s259_s27 + $0x10] sm:$0xff] %v574_v42  ;;  %v577_v46 = vadd.f32 %v827_v45, %v744_v40  ;;  %v568_v47 = vpop.f32.mrb[3].mxu1 }
 0x23f   : > { %596 = vst [vmem:[%s259_s27] sm:$0xff] %v566_v44  ;;  %v569_v48 = vadd.f32 %v744_v40, %v568_v47 }
 0x240   : > { %599 = vst [vmem:[%s259_s27 + $0x18] sm:$0xff] %v577_v46 }
 0x241   : > { %597 = vst [vmem:[%s259_s27 + $0x8] sm:$0xff] %v569_v48 }
 0x243   : > { %v830_v49 = vpop.f32.mrb[4].mxu1 }
 0x244   : > { %v590_v50 = vadd.f32 %v830_v49, %v744_v40  ;;  %v581_v51 = vpop.f32.mrb[5].mxu1 }
 0x245   : > { %v582_v52 = vadd.f32 %v744_v40, %v581_v51  ;;  %v831_v53 = vpop.f32.mrb[6].mxu1 }
 0x246   : > { %602 = vst [vmem:[%s259_s27 + $0x30] sm:$0xff] %v590_v50  ;;  %v593_v54 = vadd.f32 %v831_v53, %v744_v40  ;;  %v584_v55 = vpop.f32.mrb[7].mxu1 }
 0x247   : > { %600 = vst [vmem:[%s259_s27 + $0x20] sm:$0xff] %v582_v52  ;;  %v585_v56 = vadd.f32 %v744_v40, %v584_v55 }
 0x248   : > { %603 = vst [vmem:[%s259_s27 + $0x38] sm:$0xff] %v593_v54 }
 0x249   : > { %601 = vst [vmem:[%s259_s27 + $0x28] sm:$0xff] %v585_v56 }
 0x24a   : > { %1036 = shalt.err (!%p1033_p11)
}
 0x24b   : > { %s1037_s21 = scalar_lea.hbm %s1369_s11, 1024  ;;  %s1041_s23 = scalar_lea.hbm %s1422_s4, 2048 }
 0x24c   : > { %p1038_p0 = scmp.ne.s32.totalorder %s1369_s11, %s1037_s21  ;;  %p1042_p6 = scmp.lt.u32.totalorder %s1369_s11, %s1422_s4 }
 0x24d   : > { %p1043_p7 = scmp.lt.u32.totalorder %s1041_s23, %s1037_s21  ;;  %p1045_p8 = scmp.lt.u32.totalorder %s1037_s21, %s1369_s11 }
 0x24e   : > { %p1039_p4 = pnand %p1038_p0, %p1437_p12 }
 0x24f   : > { %p1044_p2 = por %p1043_p7, %p1042_p6 }
 0x250   : > { %p1040_p13 = pneg %p1039_p4 }
 0x251   : > { %p1046_p1 = por %p1045_p8, %p1044_p2 }
 0x253   : > { %p1047_p10 = pnand %p1046_p1, %p1040_p13 }
 0x255   : > { %1050 = shalt.err (!%p1047_p10)
}
 0x256   : > { %s1119_s13 = smov 128   ;;  %s1120_s29 = smov 8  }
 0x257   : > { %842 = dma.vmem_to_hbm [thread:$0]  (%p1437_p12), %s1364_s12, 1024, %s1369_s11, %s605_s18, %s1119_s13, %s1119_s13, %s1120_s29  }
 0x258 PF: > { %s633_s14 = sand.u32 1, %s1089_s15   ;;  %p1438_p3 = scmp.ne.s32.totalorder %s1430_s26, 0 }
 0x259   : > { %p1439_p5 = scmp.ge.s32.totalorder %s1109_s20, 2  ;;  %s634_s24 = scalar_lea.sflag [#allocation5], %s633_s14 }
 0x25b   : > { %p856_p9 = pnand %p1439_p5, %p1438_p3 }
 0x25d   : > { %1084 = dma.done.wait (!%p856_p9), %s634_s24, 1024  }
 0x25e   : > { %1086 = vsyncadd (!%p856_p9), %s634_s24, 4294966272  ;;  %s21_s20 = sadd.s32 1, %s1109_s20   ;;  %s1440_s15 = smov %s1093_s16 }
 0x25f   : > { %p18_p11 = scmp.ge.s32.totalorder %s21_s20, 4   ;;  %s1441_s16 = smov %s1097_s17 }
 0x260   : > { %s1442_s17 = smov %s1288_s22  ;;  %s1443_s18 = smov %s1105_s19 }
 0x261   : > { %s1444_s19 = smov %s1446_s5  ;;  %20 = sbr.rel (!%p18_p11) target bundleno = 7 (0x7), region = 98 }
 0x268   :  { %639 = vsyncpa [#allocation4], 1 }
 0x269   :  { %641 = vsyncpa [#allocation4 + $0x1], 1 }
 0x26a   :  { %642 = vsyncpa [#allocation7], 1 }
 0x26b   :  { %643 = vsyncpa [#allocation5], 1 }
 0x26c   :  { %645 = vsyncpa [#allocation5 + $0x1], 1 }

</bundles_post_ra>
